<compile_context>
chip_gen: v7x
topology: tpu7x:2x2x1
jax: 0.10.0
libtpu: 0.0.40
codegen_flags: <defaults>
</compile_context>

<pallas_src>
import jax
import jax.numpy as jnp
from jax.experimental import pallas as pl
from jax.experimental.pallas import tpu as pltpu

LANE = 128  # vreg lane width


def _round_up(x, m):
    return ((x + m - 1) // m) * m


def _cdiv(a, b):
    return (a + b - 1) // b


def _vmem_budget_bytes():
    """~80% of this generation's VMEM (v7x ~51 MiB, v5e/v6e ~102 MiB), clamped."""
    cap = 64 * 1024 * 1024  # conservative fallback = v7x per-TC physical VMEM
    try:
        cap = int(pltpu.get_tpu_info().vmem_capacity_bytes)
    except Exception:
        pass
    return min(int(cap * 0.8), 100 * 1024 * 1024)


# --------------------------------------------------------------------------------------
# Kernels
# --------------------------------------------------------------------------------------
def _mlp_kernel(x_ref, w1_ref, b1_ref, w2_ref, b2_ref, w3_ref, b3_ref, o_ref):
    """Fused 3-layer MLP: bf16 MXU operands, f32 accumulate / bias / ReLU.

    ReLU is fused with the down-cast so the carried intermediates are bf16.
    """
    h = jnp.dot(x_ref[...], w1_ref[...], preferred_element_type=jnp.float32) + b1_ref[...]
    h = jnp.maximum(h, 0.0).astype(w2_ref.dtype)
    h = jnp.dot(h, w2_ref[...], preferred_element_type=jnp.float32) + b2_ref[...]
    h = jnp.maximum(h, 0.0).astype(w3_ref.dtype)
    o_ref[...] = (jnp.dot(h, w3_ref[...], preferred_element_type=jnp.float32)
                  + b3_ref[...]).astype(o_ref.dtype)


def _mlp_hidden_tiled_kernel(x_ref, w1_ref, b1_ref, w2_ref, b2_ref, w3_ref, b3_ref,
                             o_ref, h1_ref, acc2_ref, acc3_ref):
    """Hidden-dim tiled fallback.  grid = (batch tile b, h2-column tile j, h1-column tile k).

    Weights are streamed through VMEM per (j, k) block instead of being resident.
    """
    j = pl.program_id(1)
    k = pl.program_id(2)
    nj = pl.num_programs(1)
    nk = pl.num_programs(2)

    # Layer 1: compute + cache the k-th hidden chunk of relu(x @ w1 + b1) once per batch
    # tile (during the j == 0 sweep); later j sweeps reuse it straight from VMEM.
    @pl.when(j == 0)
    def _():
        a1 = jnp.dot(x_ref[...], w1_ref[...],
                     preferred_element_type=jnp.float32) + b1_ref[...]
        h1_ref[k] = jnp.maximum(a1, 0.0).astype(h1_ref.dtype)

    # Layer 2: accumulate the j-th output chunk of h2 over the k reduction axis.
    @pl.when(k == 0)
    def _():
        acc2_ref[...] = jnp.zeros_like(acc2_ref)

    acc2_ref[...] += jnp.dot(h1_ref[k], w2_ref[...],
                             preferred_element_type=jnp.float32)

    # After the last k chunk: finish layer 2 and push the h2 chunk through layer 3.
    @pl.when(k == nk - 1)
    def _():
        h2_j = jnp.maximum(acc2_ref[...] + b2_ref[...], 0.0).astype(w3_ref.dtype)

        @pl.when(j == 0)
        def _():
            acc3_ref[...] = jnp.zeros_like(acc3_ref)

        acc3_ref[...] += jnp.dot(h2_j, w3_ref[...],
                                 preferred_element_type=jnp.float32)

        @pl.when(j == nj - 1)
        def _():
            o_ref[...] = (acc3_ref[...] + b3_ref[...]).astype(o_ref.dtype)


# --------------------------------------------------------------------------------------
# Parameter preparation (done ONCE, outside the forward loop)
# --------------------------------------------------------------------------------------
def prepare_params(w1, b1, w2, b2, w3, b3, *, compute_dtype=jnp.bfloat16):
    """Lane-pad and cast the weights once.  w_i: (in, out); b_i: (out,) or (1, out)."""
    state_size, hidden_dim = w1.shape
    action_size = w3.shape[1]
    Sp = _round_up(state_size, LANE)
    Hp = _round_up(hidden_dim, LANE)
    Ap = _round_up(action_size, LANE)

    def padw(a, rows, cols):
        a = jnp.asarray(a)
        return jnp.pad(a, ((0, rows - a.shape[0]),
                           (0, cols - a.shape[1]))).astype(compute_dtype)

    def padb(a, cols):
        a = jnp.asarray(a).reshape(1, -1)
        return jnp.pad(a, ((0, 0), (0, cols - a.shape[1]))).astype(jnp.float32)

    return {
        "w1": padw(w1, Sp, Hp), "b1": padb(b1, Hp),
        "w2": padw(w2, Hp, Hp), "b2": padb(b2, Hp),
        "w3": padw(w3, Hp, Ap), "b3": padb(b3, Ap),
        "dims": (state_size, hidden_dim, action_size),
        "compute_dtype": compute_dtype,
    }


# --------------------------------------------------------------------------------------
# Forward pass
# --------------------------------------------------------------------------------------
def simple_nn_apply(prepared, x, *, block_b=512, hidden_block=None,
                    force_hidden_tiled=False):
    """SimpleNN forward.  x: (B, state_size) -> (B, action_size) float32."""
    state_size, hidden_dim, action_size = prepared["dims"]
    cd = prepared["compute_dtype"]
    itemsize = jnp.dtype(cd).itemsize
    granule = 16 if itemsize == 2 else 8       # one bf16 vreg packs [16, 128] rows

    w1p, b1p = prepared["w1"], prepared["b1"]
    w2p, b2p = prepared["w2"], prepared["b2"]
    w3p, b3p = prepared["w3"], prepared["b3"]
    Sp, Hp = w1p.shape
    Ap = w3p.shape[1]

    B = x.shape[0]
    assert x.shape[1] == state_size
    B16 = _round_up(B, granule)

    budget = _vmem_budget_bytes()
    vmem_limit = budget

    # Resident (single-buffered) weight footprint.
    w_bytes = ((w1p.size + w2p.size + w3p.size) * itemsize
               + (b1p.size + b2p.size + b3p.size) * 4)

    cost = pl.CostEstimate(
        flops=int(2 * B16 * (Sp * Hp + Hp * Hp + Hp * Ap)),
        transcendentals=0,
        bytes_accessed=int(B16 * Sp * itemsize + w_bytes + B16 * Ap * 4),
    )

    def pad_x(rows):
        return jnp.pad(x, ((0, rows - B), (0, Sp - state_size))).astype(cd)

    use_hidden_tiled = force_hidden_tiled or (w_bytes > int(0.6 * budget))

    # ------------------------------------------------------------------------------
    # Fast path: all three weights resident in VMEM, batch tiled on a "parallel" grid.
    # ------------------------------------------------------------------------------
    if not use_hidden_tiled:
        # Batch-tile cap from the VMEM budget: x/out double-buffered, weights
        # single-buffered, one bf16 + one f32 hidden intermediate in flight.
        per_row = 2 * 2 * Sp * itemsize + 2 * 4 * Ap + Hp * (4 + 2 * itemsize)
        tb_cap = (int(0.85 * budget) - w_bytes) // max(per_row, 1)
        tb_cap = max(granule, (tb_cap // granule) * granule)
        tb_target = max(granule, min(block_b, tb_cap, 1024))

        tiled = B16 >= max(2 * LANE, 2 * granule)   # at least two 128-row tiles
        if tiled:
            n_b = max(2, _cdiv(B16, tb_target))
            TB = _round_up(_cdiv(B16, n_b), granule)   # minimal batch padding
            Bp = n_b * TB
        else:
            TB = Bp = B16

        xp = pad_x(Bp)
        out_shape = jax.ShapeDtypeStruct((Bp, Ap), jnp.float32)
        args = (xp, w1p, b1p, w2p, b2p, w3p, b3p)

        if not tiled:
            # Tiny latency-bound batch: grid-less single shot, everything in VMEM.
            out_p = pl.pallas_call(
                _mlp_kernel,
                out_shape=out_shape,
                in_specs=[pl.BlockSpec(memory_space=pltpu.MemorySpace.VMEM)] * 7,
                out_specs=pl.BlockSpec(memory_space=pltpu.MemorySpace.VMEM),
                compiler_params=pltpu.CompilerParams(vmem_limit_bytes=vmem_limit),
                cost_estimate=cost,
            )(*args)
        else:
            def call(single_buffer_weights):
                def resident(shape):
                    idx = lambda i: (0,) * len(shape)
                    if single_buffer_weights:
                        try:
                            # Constant index_map -> double-buffering is pure VMEM waste.
                            return pl.BlockSpec(shape, idx,
                                                pipeline_mode=pl.Buffered(1))
                        except TypeError:
                            pass
                    return pl.BlockSpec(shape, idx)

                return pl.pallas_call(
                    _mlp_kernel,
                    out_shape=out_shape,
                    grid=(Bp // TB,),
                    in_specs=[
                        pl.BlockSpec((TB, Sp), lambda i: (i, 0)),
                        resident(w1p.shape), resident(b1p.shape),
                        resident(w2p.shape), resident(b2p.shape),
                        resident(w3p.shape), resident(b3p.shape),
                    ],
                    out_specs=pl.BlockSpec((TB, Ap), lambda i: (i, 0)),
                    compiler_params=pltpu.CompilerParams(
                        dimension_semantics=("parallel",),  # megacore split on v7x
                        vmem_limit_bytes=vmem_limit),
                    cost_estimate=cost,
                )(*args)

            try:
                out_p = call(True)      # single-buffered resident weights
            except Exception:
                out_p = call(False)     # fall back to default double-buffering
        return out_p[:B, :action_size]

    # ------------------------------------------------------------------------------
    # Fallback: hidden-dim (K) tiled — weights streamed, h1 cached, f32 accumulators.
    # ------------------------------------------------------------------------------
    m = Hp // LANE
    if hidden_block is not None:
        th_m = max(1, min(m, hidden_block // LANE))
        if m % th_m != 0:
            th_m = 1
    else:
        th_m = max(d for d in range(1, min(m, 8) + 1) if m % d == 0)  # TH <= 1024
    TH = th_m * LANE
    n_h = Hp // TH

    w_blk = 2 * (Sp * TH + TH * TH + TH * Ap) * itemsize + 2 * (2 * TH + Ap) * 4
    per_row = Hp * itemsize + (TH + Ap) * 4 + 2 * Sp * itemsize + 2 * Ap * 4
    tb_cap = (int(0.85 * budget) - w_blk) // max(per_row, 1)
    tb_cap = max(granule, (tb_cap // granule) * granule)
    tb_target = max(granule, min(block_b, tb_cap, 1024))

    n_b = max(1, _cdiv(B16, tb_target))
    TB = _round_up(_cdiv(B16, n_b), granule)
    Bp = n_b * TB
    xp = pad_x(Bp)
    out_shape = jax.ShapeDtypeStruct((Bp, Ap), jnp.float32)

    out_p = pl.pallas_call(
        _mlp_hidden_tiled_kernel,
        out_shape=out_shape,
        grid=(n_b, n_h, n_h),
        in_specs=[
            pl.BlockSpec((TB, Sp), lambda b, j, k: (b, 0)),   # x
            pl.BlockSpec((Sp, TH), lambda b, j, k: (0, k)),   # w1 column chunk
            pl.BlockSpec((1, TH), lambda b, j, k: (0, k)),    # b1 chunk
            pl.BlockSpec((TH, TH), lambda b, j, k: (k, j)),   # w2 block
            pl.BlockSpec((1, TH), lambda b, j, k: (0, j)),    # b2 chunk
            pl.BlockSpec((TH, Ap), lambda b, j, k: (j, 0)),   # w3 row chunk
            pl.BlockSpec((1, Ap), lambda b, j, k: (0, 0)),    # b3
        ],
        out_specs=pl.BlockSpec((TB, Ap), lambda b, j, k: (b, 0)),
        scratch_shapes=[
            pltpu.VMEM((n_h, TB, TH), cd),        # cached h1 chunks
            pltpu.VMEM((TB, TH), jnp.float32),    # layer-2 accumulator
            pltpu.VMEM((TB, Ap), jnp.float32),    # layer-3 / output accumulator
        ],
        compiler_params=pltpu.CompilerParams(
            dimension_semantics=("parallel", "arbitrary", "arbitrary"),
            vmem_limit_bytes=vmem_limit),
        cost_estimate=cost,
    )(xp, w1p, b1p, w2p, b2p, w3p, b3p)
    return out_p[:B, :action_size]


def simple_nn_forward(x, w1, b1, w2, b2, w3, b3, **kwargs):
    """Convenience wrapper (pads weights every call — prefer prepare_params + apply)."""
    compute_dtype = kwargs.pop("compute_dtype", jnp.bfloat16)
    prepared = prepare_params(w1, b1, w2, b2, w3, b3, compute_dtype=compute_dtype)
    return simple_nn_apply(prepared, x, **kwargs)


# --------------------------------------------------------------------------------------
# Init + references
# --------------------------------------------------------------------------------------
def init_params(key, state_size, hidden_dim, action_size):
    """Mimics nn.Linear's uniform(-1/sqrt(fan_in), 1/sqrt(fan_in)) init."""
    ks = jax.random.split(key, 6)

    def lin(kw, kb, fan_in, fan_out):
        bound = 1.0 / jnp.sqrt(fan_in)
        w = jax.random.uniform(kw, (fan_in, fan_out), jnp.float32, -bound, bound)
        b = jax.random.uniform(kb, (1, fan_out), jnp.float32, -bound, bound)
        return w, b

    w1, b1 = lin(ks[0], ks[1], state_size, hidden_dim)
    w2, b2 = lin(ks[2], ks[3], hidden_dim, hidden_dim)
    w3, b3 = lin(ks[4], ks[5], hidden_dim, action_size)
    return w1, b1, w2, b2, w3, b3


def ref_forward(x, w1, b1, w2, b2, w3, b3, compute_dtype=jnp.bfloat16):
    """Pure-JAX reference with matching dtype recipe (bf16 operands, f32 accumulate)."""
    cd = compute_dtype
    h = jnp.dot(x.astype(cd), w1.astype(cd), preferred_element_type=jnp.float32) + b1
    h = jnp.maximum(h, 0.0)
    h = jnp.dot(h.astype(cd), w2.astype(cd), preferred_element_type=jnp.float32) + b2
    h = jnp.maximum(h, 0.0)
    return jnp.dot(h.astype(cd), w3.astype(cd), preferred_element_type=jnp.float32) + b3


def ref_forward_f32(x, w1, b1, w2, b2, w3, b3):
    h = jnp.maximum(x @ w1 + b1, 0.0)
    h = jnp.maximum(h @ w2 + b2, 0.0)
    return h @ w3 + b3


if __name__ == "__main__":
    key = jax.random.PRNGKey(0)
    kp, kx1, kx2, kx3 = jax.random.split(key, 4)

    # ---- Case 1: tiny latency-bound batch -> grid-less single-shot path. ----
    state_size, hidden_dim, action_size = 16, 32, 8
    params = init_params(kp, state_size, hidden_dim, action_size)
    prepared = prepare_params(*params)

    x_small = jax.random.normal(kx1, (8, state_size), jnp.float32)
    out_small = jax.block_until_ready(simple_nn_apply(prepared, x_small))

    # ---- Case 2: larger batch -> "parallel" batch-tiled resident-weight path. ----
    x_big = jax.random.normal(kx2, (300, state_size), jnp.float32)
    out_big = jax.block_until_ready(simple_nn_apply(prepared, x_big, block_b=128))

    # ---- Case 3: hidden-dim (K)-tiled fallback path (forced here at small shapes). ----
    hs, hh, ha = 24, 200, 10
    params_kt = init_params(jax.random.fold_in(kp, 1), hs, hh, ha)
    prepared_kt = prepare_params(*params_kt)
    x_kt = jax.random.normal(kx3, (72, hs), jnp.float32)
    out_kt = jax.block_until_ready(
        simple_nn_apply(prepared_kt, x_kt, block_b=48,
                        hidden_block=128, force_hidden_tiled=True))

    assert out_small.shape == (8, action_size)
    assert out_big.shape == (300, action_size)
    assert out_kt.shape == (72, ha)

    # Matched-recipe checks (bf16 operands, f32 accumulate).
    assert jnp.allclose(out_small, ref_forward(x_small, *params), atol=5e-3, rtol=5e-3)
    assert jnp.allclose(out_big, ref_forward(x_big, *params), atol=5e-3, rtol=5e-3)
    assert jnp.allclose(out_kt, ref_forward(x_kt, *params_kt), atol=5e-3, rtol=5e-3)

    # Loose sanity vs. the original full-f32 PyTorch semantics (bf16 rounding).
    assert jnp.allclose(out_small, ref_forward_f32(x_small, *params), atol=1e-1, rtol=1e-1)
    assert jnp.allclose(out_big, ref_forward_f32(x_big, *params), atol=1e-1, rtol=1e-1)
    assert jnp.allclose(out_kt, ref_forward_f32(x_kt, *params_kt), atol=1e-1, rtol=1e-1)

    print("KERNEL_OK")
</pallas_src>

<mosaic_0001>
module attributes {stable_mosaic.version = 11 : i64} {
  func.func @_mlp_kernel(%arg0: memref<16x128xbf16, #tpu.memory_space<vmem>>, %arg1: memref<128x128xbf16, #tpu.memory_space<vmem>>, %arg2: memref<1x128xf32, #tpu.memory_space<vmem>>, %arg3: memref<128x128xbf16, #tpu.memory_space<vmem>>, %arg4: memref<1x128xf32, #tpu.memory_space<vmem>>, %arg5: memref<128x128xbf16, #tpu.memory_space<vmem>>, %arg6: memref<1x128xf32, #tpu.memory_space<vmem>>, %arg7: memref<16x128xf32, #tpu.memory_space<vmem>>) attributes {dimension_semantics = [], scalar_prefetch = 0 : i64, scratch_operands = 0 : i64, tpu.core_type = #tpu.core_type<tc>} {
    %c0 = arith.constant 0 : index
    %c0_0 = arith.constant 0 : index
    %0 = vector.load %arg0[%c0, %c0_0] : memref<16x128xbf16, #tpu.memory_space<vmem>>, vector<16x128xbf16>
    %c0_1 = arith.constant 0 : index
    %c0_2 = arith.constant 0 : index
    %1 = vector.load %arg1[%c0_1, %c0_2] : memref<128x128xbf16, #tpu.memory_space<vmem>>, vector<128x128xbf16>
    %cst = arith.constant dense<0.000000e+00> : vector<16x128xf32>
    %2 = tpu.matmul %0, %1, %cst {dimension_numbers = #tpu.dot_dimension_numbers<[1], [0], [0], [1], [0, 0, 1, 1], [], []>} : vector<16x128xbf16>, vector<128x128xbf16>, vector<16x128xf32> -> vector<16x128xf32>
    %c0_3 = arith.constant 0 : index
    %c0_4 = arith.constant 0 : index
    %3 = vector.load %arg2[%c0_3, %c0_4] : memref<1x128xf32, #tpu.memory_space<vmem>>, vector<1x128xf32>
    %4 = vector.broadcast %3 : vector<1x128xf32> to vector<16x128xf32>
    %5 = arith.addf %2, %4 : vector<16x128xf32>
    %cst_5 = arith.constant 0.000000e+00 : f32
    %6 = vector.broadcast %cst_5 : f32 to vector<16x128xf32>
    %7 = arith.maximumf %5, %6 : vector<16x128xf32>
    %8 = arith.truncf %7 : vector<16x128xf32> to vector<16x128xbf16>
    %c0_6 = arith.constant 0 : index
    %c0_7 = arith.constant 0 : index
    %9 = vector.load %arg3[%c0_6, %c0_7] : memref<128x128xbf16, #tpu.memory_space<vmem>>, vector<128x128xbf16>
    %cst_8 = arith.constant dense<0.000000e+00> : vector<16x128xf32>
    %10 = tpu.matmul %8, %9, %cst_8 {dimension_numbers = #tpu.dot_dimension_numbers<[1], [0], [0], [1], [0, 0, 1, 1], [], []>} : vector<16x128xbf16>, vector<128x128xbf16>, vector<16x128xf32> -> vector<16x128xf32>
    %c0_9 = arith.constant 0 : index
    %c0_10 = arith.constant 0 : index
    %11 = vector.load %arg4[%c0_9, %c0_10] : memref<1x128xf32, #tpu.memory_space<vmem>>, vector<1x128xf32>
    %12 = vector.broadcast %11 : vector<1x128xf32> to vector<16x128xf32>
    %13 = arith.addf %10, %12 : vector<16x128xf32>
    %cst_11 = arith.constant 0.000000e+00 : f32
    %14 = vector.broadcast %cst_11 : f32 to vector<16x128xf32>
    %15 = arith.maximumf %13, %14 : vector<16x128xf32>
    %16 = arith.truncf %15 : vector<16x128xf32> to vector<16x128xbf16>
    %c0_12 = arith.constant 0 : index
    %c0_13 = arith.constant 0 : index
    %17 = vector.load %arg5[%c0_12, %c0_13] : memref<128x128xbf16, #tpu.memory_space<vmem>>, vector<128x128xbf16>
    %cst_14 = arith.constant dense<0.000000e+00> : vector<16x128xf32>
    %18 = tpu.matmul %16, %17, %cst_14 {dimension_numbers = #tpu.dot_dimension_numbers<[1], [0], [0], [1], [0, 0, 1, 1], [], []>} : vector<16x128xbf16>, vector<128x128xbf16>, vector<16x128xf32> -> vector<16x128xf32>
    %c0_15 = arith.constant 0 : index
    %c0_16 = arith.constant 0 : index
    %19 = vector.load %arg6[%c0_15, %c0_16] : memref<1x128xf32, #tpu.memory_space<vmem>>, vector<1x128xf32>
    %20 = vector.broadcast %19 : vector<1x128xf32> to vector<16x128xf32>
    %21 = arith.addf %18, %20 : vector<16x128xf32>
    %c0_17 = arith.constant 0 : index
    %c0_18 = arith.constant 0 : index
    %22 = vector.load %arg7[%c0_17, %c0_18] : memref<16x128xf32, #tpu.memory_space<vmem>>, vector<16x128xf32>
    tpu.vector_store %arg7[%c0_17, %c0_18], %21 {strides = array<i32>} : memref<16x128xf32, #tpu.memory_space<vmem>>, vector<16x128xf32>,
    return
  }
}

</mosaic_0001>

<bundles_post_ra>
// kernel: tpu_custom_call.1
= control target key start
LH: loop header
LB: loop body
LE: loop exit
PB: predicated region body
PF: predicated region fallthrough
CT: control target
= control target key end

     0   :  { %12 = vsyncpa [#allocation3], 0  ;;  %s899_s0 = inlined_call_operand.hbm [shape: bf16[16,128], index: 0, kind: input, shape index: {}]   ;;  %s900_s1 = inlined_call_operand.hbm [shape: bf16[128,128], index: 1, kind: input, shape index: {}]   ;;  %s901_s2 = inlined_call_operand.vmem [shape: f32[1,128], index: 2, kind: input, shape index: {}]   ;;  %s902_s3 = inlined_call_operand.hbm [shape: bf16[128,128], index: 3, kind: input, shape index: {}]   ;;  %s903_s4 = inlined_call_operand.vmem [shape: f32[1,128], index: 4, kind: input, shape index: {}]   ;;  %s904_s5 = inlined_call_operand.hbm [shape: bf16[128,128], index: 5, kind: input, shape index: {}]   ;;  %s905_s6 = inlined_call_operand.vmem [shape: f32[1,128], index: 6, kind: input, shape index: {}]   ;;  %s906_s7 = inlined_call_operand.hbm [shape: f32[16,128], index: 7, kind: output, shape index: {}]  }
   0x1   :  { %13 = vsyncpa [#allocation6], 0 }
   0x2   :  { %14 = vsyncpa [#allocation9], 0 }
   0x3   :  { %15 = vsyncpa [#allocation4], 0  ;;  %s723_s24 = smov [#allocation5]   ;;  %s724_s26 = smov [#allocation2]  }
   0x4   :  { %s33_s25 = sshll.u32 %s723_s24, 4  ;;  %s21_s27 = sshll.u32 %s724_s26, 4  ;;  %s34_s25 = int_to_ptr.vmem [resolvable:$true] %s33_s25  ;;  %s774_s27 = int_to_ptr.vmem [resolvable:$true] %s21_s27 }
   0x5   :  { %s605_s30 = scalar_lea.hbm %s900_s1, 1024 }
   0x6   :  { %p606_p0 = scmp.ne.s32.totalorder %s900_s1, %s605_s30  ;;  %p609_p1 = scmp.lt.u32.totalorder %s605_s30, %s900_s1 }
   0x8   :  { %p611_p2 = pnand %p609_p1, %p606_p0 }
   0xa   :  { %614 = shalt.err (!%p611_p2)
}
   0xb   :  { %s615_s12 = scalar_lea.vmem %s34_s25, 1024  ;;  %p620_p4 = scmp.lt.s32.totalorder %s34_s25, %s34_s25 }
   0xc   :  { %p616_p3 = scmp.ne.s32.totalorder %s34_s25, %s615_s12  ;;  %p621_p5 = scmp.lt.s32.totalorder %s615_s12, %s615_s12 }
   0xe   :  { %p622_p6 = por %p621_p5, %p620_p4 }
  0x10   :  { %p623_p7 = pnand %p622_p6, %p616_p3 }
  0x12   :  { %626 = shalt.err (!%p623_p7)
}
  0x13   :  { %s725_s13 = smov 64   ;;  %s726_s14 = smov 4  }
  0x14   :  { %39 = dma.hbm_to_vmem [thread:$0]  %s900_s1, 1024, %s34_s25, [#allocation6], %s725_s13, %s725_s13, %s726_s14  }
  0x15   :  { %s627_s19 = scalar_lea.hbm %s899_s0, 128 }
  0x16   :  { %p628_p8 = scmp.ne.s32.totalorder %s899_s0, %s627_s19  ;;  %p631_p9 = scmp.lt.u32.totalorder %s627_s19, %s899_s0 }
  0x18   :  { %p633_p10 = pnand %p631_p9, %p628_p8 }
  0x1a   :  { %636 = shalt.err (!%p633_p10)
}
  0x1b   :  { %s637_s24 = scalar_lea.vmem %s774_s27, 128  ;;  %p642_p12 = scmp.lt.s32.totalorder %s774_s27, %s774_s27 }
  0x1c   :  { %p638_p11 = scmp.ne.s32.totalorder %s774_s27, %s637_s24  ;;  %p643_p13 = scmp.lt.s32.totalorder %s637_s24, %s637_s24 }
  0x1e   :  { %p644_p0 = por %p643_p13, %p642_p12 }
  0x20   :  { %p645_p1 = pnand %p644_p0, %p638_p11 }
  0x22   :  { %648 = shalt.err (!%p645_p1)
}
  0x23   :  { %27 = dma.hbm_to_vmem [thread:$0]  %s899_s0, 128, %s774_s27, [#allocation3], %s725_s13, %s725_s13, %s726_s14  }
  0x24   :  { %s727_s26 = smov [#allocation7]   ;;  %s728_s29 = smov [#allocation8]  }
  0x25   :  { %s47_s28 = sshll.u32 %s727_s26, 4  ;;  %s61_s30 = sshll.u32 %s728_s29, 4  ;;  %s48_s28 = int_to_ptr.vmem [resolvable:$true] %s47_s28  ;;  %s811_s30 = int_to_ptr.vmem [resolvable:$true] %s61_s30 }
  0x26   :  { %s649_s10 = scalar_lea.hbm %s902_s3, 1024 }
  0x27   :  { %p650_p2 = scmp.ne.s32.totalorder %s902_s3, %s649_s10  ;;  %p653_p3 = scmp.lt.u32.totalorder %s649_s10, %s902_s3 }
  0x29   :  { %p655_p4 = pnand %p653_p3, %p650_p2 }
  0x2b   :  { %658 = shalt.err (!%p655_p4)
}
  0x2c   :  { %s659_s0 = scalar_lea.vmem %s48_s28, 1024  ;;  %p664_p6 = scmp.lt.s32.totalorder %s48_s28, %s48_s28 }
  0x2d   :  { %p660_p5 = scmp.ne.s32.totalorder %s48_s28, %s659_s0  ;;  %p665_p7 = scmp.lt.s32.totalorder %s659_s0, %s659_s0 }
  0x2f   :  { %p666_p8 = por %p665_p7, %p664_p6 }
  0x31   :  { %p667_p9 = pnand %p666_p8, %p660_p5 }
  0x33   :  { %670 = shalt.err (!%p667_p9)
}
  0x34   :  { %53 = dma.hbm_to_vmem [thread:$0]  %s902_s3, 1024, %s48_s28, [#allocation6], %s725_s13, %s725_s13, %s726_s14  }
  0x35   :  { %s671_s20 = scalar_lea.hbm %s904_s5, 1024 }
  0x36   :  { %p672_p10 = scmp.ne.s32.totalorder %s904_s5, %s671_s20  ;;  %p675_p11 = scmp.lt.u32.totalorder %s671_s20, %s904_s5 }
  0x38   :  { %p677_p12 = pnand %p675_p11, %p672_p10 }
  0x3a   :  { %680 = shalt.err (!%p677_p12)
}
  0x3b   :  { %s681_s1 = scalar_lea.vmem %s811_s30, 1024  ;;  %p686_p0 = scmp.lt.s32.totalorder %s811_s30, %s811_s30 }
  0x3c   :  { %p682_p13 = scmp.ne.s32.totalorder %s811_s30, %s681_s1  ;;  %p687_p1 = scmp.lt.s32.totalorder %s681_s1, %s681_s1 }
  0x3e   :  { %p688_p2 = por %p687_p1, %p686_p0 }
  0x40   :  { %p689_p3 = pnand %p688_p2, %p682_p13 }
  0x42   :  { %692 = shalt.err (!%p689_p3)
}
  0x43   :  { %67 = dma.hbm_to_vmem [thread:$0]  %s904_s5, 1024, %s811_s30, [#allocation9], %s725_s13, %s725_s13, %s726_s14  }
  0x44   :  { %715 = dma.done.wait [#allocation3], 128  }
  0x45   :  { %716 = vsyncadd [#allocation3], 4294967168 }
  0x46   :  { %717 = dma.done.wait [#allocation6], 2048  }
  0x47   :  { %718 = vsyncadd [#allocation6], 4294965248 }
  0x48   :  { %719 = dma.done.wait [#allocation9], 1024  }
  0x49   :  { %720 = vsyncadd [#allocation9], 4294966272  ;;  %v729_v0 = vmov 0.0   ;;  %vm730_vm0 = vmmov 0   ;;  %v580_v1 = vld [vmem:[#allocation5] sm:$0xff]   ;;  %v581_v2 = vld [vmem:[#allocation5 + $0x8] sm:$0xff]  }
  0x4a   :  { %509 = vmatprep.subr.bf16.mxu0 %v729_v0  ;;  %525 = vmatprep.mubr.msk.bf16.mxu0 %vm730_vm0, %v729_v0  ;;  %v582_v3 = vld [vmem:[#allocation5 + $0x10] sm:$0xff]   ;;  %v589_v4 = vld [vmem:[#allocation7] sm:$0xff]   ;;  %v583_v5 = vld [vmem:[#allocation5 + $0x18] sm:$0xff]   ;;  %s731_s29 = smov [#allocation10]  }
  0x4b   :  { %529 = vmatprep.subr.bf16.mxu1 %v729_v0  ;;  %545 = vmatprep.mubr.msk.bf16.mxu1 %vm730_vm0, %v729_v0  ;;  %v590_v6 = vld [vmem:[#allocation7 + $0x8] sm:$0xff]   ;;  %v584_v7 = vld [vmem:[#allocation5 + $0x20] sm:$0xff]   ;;  %v591_v8 = vld [vmem:[#allocation7 + $0x10] sm:$0xff]   ;;  %s440_s30 = sshll.u32 %s731_s29, 4  ;;  %s441_s30 = int_to_ptr.vmem [resolvable:$true] %s440_s30 }
  0x4c   :  { %510 = vmatpush3.bf16.msra.mxu0 %v580_v1  ;;  %530 = vmatpush3.bf16.msra.mxu1 %v589_v4  ;;  %v585_v9 = vld [vmem:[#allocation5 + $0x28] sm:$0xff]   ;;  %v592_v10 = vld [vmem:[#allocation7 + $0x18] sm:$0xff]   ;;  %v586_v11 = vld [vmem:[#allocation5 + $0x30] sm:$0xff]   ;;  %p698_p5 = scmp.lt.s32.totalorder %s441_s30, %s441_s30 }
  0x4d   :  { %511 = vmatprep.subr.bf16.mxu0 %v729_v0  ;;  %531 = vmatprep.subr.bf16.mxu1 %v729_v0  ;;  %v593_v12 = vld [vmem:[#allocation7 + $0x20] sm:$0xff]   ;;  %v587_v13 = vld [vmem:[#allocation5 + $0x38] sm:$0xff]   ;;  %v594_v14 = vld [vmem:[#allocation7 + $0x28] sm:$0xff]  }
  0x4e   :  { %v588_v15 = vld [vmem:[#allocation2] sm:$0xff]   ;;  %v595_v16 = vld [vmem:[#allocation7 + $0x30] sm:$0xff]   ;;  %v597_v18 = vld [vmem:[#allocation8] sm:$0xff]  }
  0x4f   :  { %v596_v17 = vld [vmem:[#allocation7 + $0x38] sm:$0xff]   ;;  %v598_v19 = vld [vmem:[#allocation8 + $0x8] sm:$0xff]   ;;  %v599_v20 = vld [vmem:[#allocation8 + $0x10] sm:$0xff]  }
  0x50   :  { %512 = vmatpush3.bf16.msra.mxu0 %v581_v2  ;;  %532 = vmatpush3.bf16.msra.mxu1 %v590_v6  ;;  %v600_v21 = vld [vmem:[#allocation8 + $0x18] sm:$0xff]   ;;  %v601_v22 = vld [vmem:[#allocation8 + $0x20] sm:$0xff]   ;;  %v602_v23 = vld [vmem:[#allocation8 + $0x28] sm:$0xff]  }
  0x51   :  { %513 = vmatprep.subr.bf16.mxu0 %v729_v0  ;;  %533 = vmatprep.subr.bf16.mxu1 %v729_v0  ;;  %v454_v24 = vld [vmem:[%s901_s2] ss:$0 sm:$0xff]  ;;  %v603_v34 = vld [vmem:[#allocation8 + $0x30] sm:$0xff]  }
  0x52   :  { %v604_v35 = vld [vmem:[#allocation8 + $0x38] sm:$0xff]  }
  0x53   :  { %v464_v36 = vld [vmem:[%s903_s4] ss:$0 sm:$0xff]  ;;  %s693_s4 = scalar_lea.vmem %s441_s30, 256 }
  0x54   :  { %514 = vmatpush3.bf16.msra.mxu0 %v582_v3  ;;  %534 = vmatpush3.bf16.msra.mxu1 %v591_v8  ;;  %v473_v46 = vld [vmem:[%s905_s6] ss:$0 sm:$0xff]  ;;  %p694_p4 = scmp.ne.s32.totalorder %s441_s30, %s693_s4  ;;  %p699_p6 = scmp.lt.s32.totalorder %s693_s4, %s693_s4 }
  0x55   :  { %515 = vmatprep.subr.bf16.mxu0 %v729_v0  ;;  %535 = vmatprep.subr.bf16.mxu1 %v729_v0 }
  0x56   :  { %p700_p7 = por %p699_p6, %p698_p5 }
  0x58   :  { %516 = vmatpush3.bf16.msra.mxu0 %v583_v5  ;;  %536 = vmatpush3.bf16.msra.mxu1 %v592_v10  ;;  %p701_p8 = pnand %p700_p7, %p694_p4 }
  0x59   :  { %517 = vmatprep.subr.bf16.mxu0 %v729_v0  ;;  %537 = vmatprep.subr.bf16.mxu1 %v729_v0 }
  0x5c   :  { %518 = vmatpush3.bf16.msra.mxu0 %v584_v7  ;;  %538 = vmatpush3.bf16.msra.mxu1 %v593_v12 }
  0x5d   :  { %519 = vmatprep.subr.bf16.mxu0 %v729_v0  ;;  %539 = vmatprep.subr.bf16.mxu1 %v729_v0 }
  0x60   :  { %520 = vmatpush3.bf16.msra.mxu0 %v585_v9  ;;  %540 = vmatpush3.bf16.msra.mxu1 %v594_v14 }
  0x61   :  { %521 = vmatprep.subr.bf16.mxu0 %v729_v0  ;;  %541 = vmatprep.subr.bf16.mxu1 %v729_v0 }
  0x64   :  { %522 = vmatpush3.bf16.msra.mxu0 %v586_v11  ;;  %542 = vmatpush3.bf16.msra.mxu1 %v595_v16 }
  0x65   :  { %523 = vmatprep.subr.bf16.mxu0 %v729_v0  ;;  %543 = vmatprep.subr.bf16.mxu1 %v729_v0 }
  0x68   :  { %524 = vmatpush3.bf16.msra.mxu0 %v587_v13  ;;  %544 = vmatpush3.bf16.msra.mxu1 %v596_v17 }
  0x69   :  { %549 = vmatprep.subr.bf16.mxu0 %v729_v0 }
  0x6b   :  { %526 = vmatmul.mubr.bf16.vlgmr.msra.gmra.mrb[0].mxu0 %v588_v15 }
  0x6c   :  { %565 = vmatprep.mubr.msk.bf16.mxu0 %vm730_vm0, %v729_v0  ;;  %550 = vmatpush3.bf16.msra.mxu0 %v597_v18 }
  0x6d   :  { %551 = vmatprep.subr.bf16.mxu0 %v729_v0 }
  0x70   :  { %552 = vmatpush3.bf16.msra.mxu0 %v598_v19 }
  0x71   :  { %553 = vmatprep.subr.bf16.mxu0 %v729_v0 }
  0x74   :  { %554 = vmatpush3.bf16.msra.mxu0 %v599_v20 }
  0x75   :  { %555 = vmatprep.subr.bf16.mxu0 %v729_v0 }
  0x78   :  { %556 = vmatpush3.bf16.msra.mxu0 %v600_v21 }
  0x79   :  { %557 = vmatprep.subr.bf16.mxu0 %v729_v0 }
  0x7c   :  { %558 = vmatpush3.bf16.msra.mxu0 %v601_v22 }
  0x7d   :  { %559 = vmatprep.subr.bf16.mxu0 %v729_v0 }
  0x80   :  { %560 = vmatpush3.bf16.msra.mxu0 %v602_v23 }
  0x81   :  { %561 = vmatprep.subr.bf16.mxu0 %v729_v0 }
  0x84   :  { %562 = vmatpush3.bf16.msra.mxu0 %v603_v34 }
  0x85   :  { %563 = vmatprep.subr.bf16.mxu0 %v729_v0 }
  0x88   :  { %564 = vmatpush3.bf16.msra.mxu0 %v604_v35 }
 0x13e   :  { %v196_v25 = vpop.f32.mrb[0].mxu0 }
 0x13f   :  { %v197_v26 = vadd.f32 %v454_v24, %v196_v25  ;;  %v527_v27 = vpop.f32.mrb[1].mxu0 }
 0x140   :  { %v199_v28 = vpop.f32.mrb[2].mxu0 }
 0x141   :  { %v200_v29 = vadd.f32 %v454_v24, %v199_v28  ;;  %v528_v30 = vpop.f32.mrb[3].mxu0  ;;  %v203_v31 = vmax.f32 %v197_v26, 0.0 }
 0x143   :  { %v204_v32 = vmax.f32 %v200_v29, 0.0 }
 0x145   :  { %v205_v33 = vpack.c.bf16 %v204_v32, %v203_v31 }
 0x147   :  { %546 = vmatmul.mubr.bf16.vlgmr.msra.gmra.mrb[0].mxu1 %v205_v33 }
 0x21a   :  { %v311_v37 = vpop.f32.mrb[0].mxu1 }
 0x21b   :  { %v312_v38 = vadd.f32 %v464_v36, %v311_v37  ;;  %v547_v39 = vpop.f32.mrb[1].mxu1 }
 0x21c   :  { %v314_v40 = vpop.f32.mrb[2].mxu1 }
 0x21d   :  { %v315_v41 = vadd.f32 %v464_v36, %v314_v40  ;;  %v548_v42 = vpop.f32.mrb[3].mxu1  ;;  %v318_v43 = vmax.f32 %v312_v38, 0.0 }
 0x21f   :  { %v319_v44 = vmax.f32 %v315_v41, 0.0 }
 0x221   :  { %v320_v45 = vpack.c.bf16 %v319_v44, %v318_v43 }
 0x223   :  { %566 = vmatmul.mubr.bf16.vlgmr.msra.gmra.mrb[4].mxu0 %v320_v45 }
 0x2f6   :  { %v426_v47 = vpop.f32.mrb[4].mxu0 }
 0x2f7   :  { %v427_v48 = vadd.f32 %v473_v46, %v426_v47  ;;  %v567_v49 = vpop.f32.mrb[5].mxu0 }
 0x2f8   :  { %v429_v50 = vpop.f32.mrb[6].mxu0 }
 0x2f9   :  { %433 = vst [vmem:[#allocation10] sm:$0xff] %v427_v48  ;;  %v430_v51 = vadd.f32 %v473_v46, %v429_v50  ;;  %v568_v52 = vpop.f32.mrb[7].mxu0 }
 0x2fb   :  { %434 = vst [vmem:[#allocation10 + $0x8] sm:$0xff] %v430_v51 }
 0x2fc   :  { %704 = shalt.err (!%p701_p8)
}
 0x2fd   :  { %s705_s9 = scalar_lea.hbm %s906_s7, 256 }
 0x2fe   :  { %p706_p9 = scmp.ne.s32.totalorder %s906_s7, %s705_s9  ;;  %p709_p10 = scmp.lt.u32.totalorder %s705_s9, %s906_s7 }
 0x300   :  { %p711_p11 = pnand %p709_p10, %p706_p9 }
 0x302   :  { %714 = shalt.err (!%p711_p11)
}
 0x303   :  { %s732_s16 = smov 128   ;;  %s733_s0 = smov 8  }
 0x304   :  { %446 = dma.vmem_to_hbm [thread:$0]  %s441_s30, 256, %s906_s7, [#allocation4], %s732_s16, %s732_s16, %s733_s0  }
 0x305   :  { %721 = dma.done.wait [#allocation4], 256  }
 0x306   :  { %722 = vsyncadd [#allocation4], 4294967040 }
 0x307   :  { %450 = vsyncpa [#allocation3], 1 }
 0x308   :  { %451 = vsyncpa [#allocation6], 1 }
 0x309   :  { %452 = vsyncpa [#allocation9], 1 }
 0x30a   :  { %453 = vsyncpa [#allocation4], 1 }

</bundles_post_ra>
